<compile_context>
chip_gen: v7x
topology: tpu7x:2x2x1
jax: 0.10.0
libtpu: 0.0.40
codegen_flags: <defaults>
</compile_context>

<pallas_src>
import jax
import jax.numpy as jnp
from jax.experimental import pallas as pl
from jax.experimental.pallas import tpu as pltpu


def _camera_kernel(b_ref, pc_ref, mean_ref, out_ref, acc_ref):
    """One (TM, TN) output tile; K is the innermost (reduction) grid axis."""
    k = pl.program_id(2)

    @pl.when(k == 0)
    def _():
        acc_ref[...] = jnp.zeros_like(acc_ref)

    acc_ref[...] += jnp.dot(
        b_ref[...], pc_ref[...], preferred_element_type=jnp.float32)

    @pl.when(k == pl.num_programs(2) - 1)
    def _():
        # Fused bias + ReLU on the finished accumulator tile.
        ss = acc_ref[...] + mean_ref[...]          # (TM, TN) + (1, TN) broadcast
        out_ref[...] = jnp.maximum(ss, 0.0).astype(out_ref.dtype)


def _pick_tile(dim, target):
    # Use an aligned tile when it divides evenly (multiples of (8,128) at scale);
    # otherwise fall back to the full dimension (always a legal BlockSpec).
    return target if (dim > target and dim % target == 0) else dim


def camera_forward(b, pc, mean, *, tm=256, tn=512, tk=512):
    """JAX/Pallas equivalent of Camera.forward(b) -> (ss_r, ss_g, ss_b)."""
    b = b.astype(jnp.float32)
    pc = pc.astype(jnp.float32)
    mean = mean.astype(jnp.float32)

    M, K = b.shape
    K2, N = pc.shape
    assert K == K2, (K, K2)
    assert mean.shape == (N,), mean.shape
    wavelength = N // 3
    assert 3 * wavelength == N, N

    TM = _pick_tile(M, tm)
    TN = _pick_tile(N, tn)
    TK = _pick_tile(K, tk)

    mean_row = mean.reshape(1, N)

    ss = pl.pallas_call(
        _camera_kernel,
        out_shape=jax.ShapeDtypeStruct((M, N), jnp.float32),
        grid=(pl.cdiv(M, TM), pl.cdiv(N, TN), pl.cdiv(K, TK)),
        in_specs=[
            pl.BlockSpec((TM, TK), lambda i, j, k: (i, k)),   # b tile
            pl.BlockSpec((TK, TN), lambda i, j, k: (k, j)),   # pc tile
            pl.BlockSpec((1, TN), lambda i, j, k: (0, j)),    # mean row tile
        ],
        out_specs=pl.BlockSpec((TM, TN), lambda i, j, k: (i, j)),
        scratch_shapes=[pltpu.VMEM((TM, TN), jnp.float32)],
        compiler_params=pltpu.CompilerParams(
            dimension_semantics=("parallel", "parallel", "arbitrary")),
    )(b, pc, mean_row)

    ss_r = ss[:, 0:wavelength]
    ss_g = ss[:, wavelength:2 * wavelength]
    ss_b = ss[:, 2 * wavelength:3 * wavelength]
    return ss_r, ss_g, ss_b


def _reference(b, pc, mean):
    ss = jnp.maximum(jnp.dot(b, pc) + mean, 0.0)
    w = mean.shape[0] // 3
    return ss[:, :w], ss[:, w:2 * w], ss[:, 2 * w:3 * w]


if __name__ == "__main__":
    key = jax.random.PRNGKey(0)
    k_b, k_pc, k_mean = jax.random.split(key, 3)

    B = 2            # batch
    n_pcs = 8        # number of principal components (b's feature dim)
    wavelength = 32  # mean has 3 * wavelength entries

    b = jax.random.normal(k_b, (B, n_pcs), jnp.float32)
    pc = jax.random.normal(k_pc, (n_pcs, 3 * wavelength), jnp.float32)
    mean = jax.random.normal(k_mean, (3 * wavelength,), jnp.float32)

    ss_r, ss_g, ss_b = camera_forward(b, pc, mean)
    (ss_r, ss_g, ss_b) = jax.block_until_ready((ss_r, ss_g, ss_b))

    assert ss_r.shape == (B, wavelength), ss_r.shape
    assert ss_g.shape == (B, wavelength), ss_g.shape
    assert ss_b.shape == (B, wavelength), ss_b.shape

    ref_r, ref_g, ref_b = _reference(b, pc, mean)
    for got, ref in ((ss_r, ref_r), (ss_g, ref_g), (ss_b, ref_b)):
        assert jnp.allclose(got, ref, atol=1e-5, rtol=1e-5), float(
            jnp.max(jnp.abs(got - ref)))

    print("KERNEL_OK")
</pallas_src>

<mosaic_0001>
module attributes {stable_mosaic.version = 11 : i64} {
  func.func @_camera_kernel(%arg0: i32, %arg1: i32, %arg2: i32, %arg3: memref<2x8xf32, #tpu.memory_space<vmem>>, %arg4: memref<8x96xf32, #tpu.memory_space<vmem>>, %arg5: memref<1x96xf32, #tpu.memory_space<vmem>>, %arg6: memref<2x96xf32, #tpu.memory_space<vmem>>, %arg7: memref<2x96xf32, #tpu.memory_space<vmem>>) attributes {dimension_semantics = [#tpu.dimension_semantics<parallel>, #tpu.dimension_semantics<parallel>, #tpu.dimension_semantics<arbitrary>], iteration_bounds = array<i64: 1, 1, 1>, scalar_prefetch = 0 : i64, scratch_operands = 1 : i64, tpu.core_type = #tpu.core_type<tc>, window_params = [{transform_indices = @transform_0, window_bounds = array<i64: 2, 8>}, {transform_indices = @transform_1, window_bounds = array<i64: 8, 96>}, {transform_indices = @transform_2, window_bounds = array<i64: 1, 96>}, {transform_indices = @transform_3, window_bounds = array<i64: 2, 96>}]} {
    %c0_i32 = arith.constant 0 : i32
    %0 = arith.cmpi eq, %arg2, %c0_i32 : i32
    %1 = arith.extui %0 : i1 to i32
    %c0_i32_0 = arith.constant 0 : i32
    %2 = arith.cmpi ne, %1, %c0_i32_0 : i32
    scf.if %2 {
      %cst_10 = arith.constant 0.000000e+00 : f32
      %12 = vector.broadcast %cst_10 : f32 to vector<2x96xf32>
      %c0_11 = arith.constant 0 : index
      %c0_12 = arith.constant 0 : index
      %13 = vector.load %arg7[%c0_11, %c0_12] : memref<2x96xf32, #tpu.memory_space<vmem>>, vector<2x96xf32>
      tpu.vector_store %arg7[%c0_11, %c0_12], %12 {strides = array<i32>} : memref<2x96xf32, #tpu.memory_space<vmem>>, vector<2x96xf32>,
    } else {
    }
    %c0 = arith.constant 0 : index
    %c0_1 = arith.constant 0 : index
    %3 = vector.load %arg7[%c0, %c0_1] : memref<2x96xf32, #tpu.memory_space<vmem>>, vector<2x96xf32>
    %c0_2 = arith.constant 0 : index
    %c0_3 = arith.constant 0 : index
    %4 = vector.load %arg3[%c0_2, %c0_3] : memref<2x8xf32, #tpu.memory_space<vmem>>, vector<2x8xf32>
    %c0_4 = arith.constant 0 : index
    %c0_5 = arith.constant 0 : index
    %5 = vector.load %arg4[%c0_4, %c0_5] : memref<8x96xf32, #tpu.memory_space<vmem>>, vector<8x96xf32>
    %cst = arith.constant dense<0.000000e+00> : vector<2x96xf32>
    %6 = tpu.matmul %4, %5, %cst {dimension_numbers = #tpu.dot_dimension_numbers<[1], [0], [0], [1], [0, 0, 1, 1], [], []>} : vector<2x8xf32>, vector<8x96xf32>, vector<2x96xf32> -> vector<2x96xf32>
    %7 = arith.addf %3, %6 : vector<2x96xf32>
    %c0_6 = arith.constant 0 : index
    %c0_7 = arith.constant 0 : index
    %8 = vector.load %arg7[%c0_6, %c0_7] : memref<2x96xf32, #tpu.memory_space<vmem>>, vector<2x96xf32>
    tpu.vector_store %arg7[%c0_6, %c0_7], %7 {strides = array<i32>} : memref<2x96xf32, #tpu.memory_space<vmem>>, vector<2x96xf32>,
    %c0_i32_8 = arith.constant 0 : i32
    %9 = arith.cmpi eq, %arg2, %c0_i32_8 : i32
    %10 = arith.extui %9 : i1 to i32
    %c0_i32_9 = arith.constant 0 : i32
    %11 = arith.cmpi ne, %10, %c0_i32_9 : i32
    scf.if %11 {
      %c0_10 = arith.constant 0 : index
      %c0_11 = arith.constant 0 : index
      %12 = vector.load %arg7[%c0_10, %c0_11] : memref<2x96xf32, #tpu.memory_space<vmem>>, vector<2x96xf32>
      %c0_12 = arith.constant 0 : index
      %c0_13 = arith.constant 0 : index
      %13 = vector.load %arg5[%c0_12, %c0_13] : memref<1x96xf32, #tpu.memory_space<vmem>>, vector<1x96xf32>
      %14 = vector.broadcast %13 : vector<1x96xf32> to vector<2x96xf32>
      %15 = arith.addf %12, %14 : vector<2x96xf32>
      %cst_14 = arith.constant 0.000000e+00 : f32
      %16 = vector.broadcast %cst_14 : f32 to vector<2x96xf32>
      %17 = arith.maximumf %15, %16 : vector<2x96xf32>
      %c0_15 = arith.constant 0 : index
      %c0_16 = arith.constant 0 : index
      %18 = vector.load %arg6[%c0_15, %c0_16] : memref<2x96xf32, #tpu.memory_space<vmem>>, vector<2x96xf32>
      tpu.vector_store %arg6[%c0_15, %c0_16], %17 {strides = array<i32>} : memref<2x96xf32, #tpu.memory_space<vmem>>, vector<2x96xf32>,
    } else {
    }
    return
  }
  func.func @transform_0(%arg0: i32, %arg1: i32, %arg2: i32) -> (i32, i32) {
    %c0_i32 = arith.constant 0 : i32
    return %arg0, %arg2 : i32, i32
  }
  func.func @transform_1(%arg0: i32, %arg1: i32, %arg2: i32) -> (i32, i32) {
    %c0_i32 = arith.constant 0 : i32
    return %arg2, %arg1 : i32, i32
  }
  func.func @transform_2(%arg0: i32, %arg1: i32, %arg2: i32) -> (i32, i32) {
    %c0_i32 = arith.constant 0 : i32
    %c0_i32_0 = arith.constant 0 : i32
    return %c0_i32, %arg1 : i32, i32
  }
  func.func @transform_3(%arg0: i32, %arg1: i32, %arg2: i32) -> (i32, i32) {
    %c0_i32 = arith.constant 0 : i32
    return %arg0, %arg1 : i32, i32
  }
}

</mosaic_0001>

<bundles_post_ra>
// kernel: tpu_custom_call.1
= control target key start
LH: loop header
LB: loop body
LE: loop exit
PB: predicated region body
PF: predicated region fallthrough
CT: control target
= control target key end

     0   :  { %8 = vsyncpa [#allocation4], 0  ;;  %s308_s0 = inlined_call_operand.hbm [shape: f32[2,8], index: 0, kind: input, shape index: {}]   ;;  %s309_s1 = inlined_call_operand.hbm [shape: f32[8,96], index: 1, kind: input, shape index: {}]   ;;  %s310_s2 = inlined_call_operand.vmem [shape: f32[1,96], index: 2, kind: input, shape index: {}]   ;;  %s311_s3 = inlined_call_operand.hbm [shape: f32[2,96], index: 3, kind: output, shape index: {}]  }
   0x1   :  { %9 = vsyncpa [#allocation7], 0 }
   0x2   :  { %10 = vsyncpa [#allocation5], 0  ;;  %s241_s12 = smov [#allocation3]   ;;  %s242_s14 = smov [#allocation6]  }
   0x3   :  { %s17_s13 = sshll.u32 %s241_s12, 4  ;;  %s27_s15 = sshll.u32 %s242_s14, 4  ;;  %s18_s13 = int_to_ptr.vmem [resolvable:$true] %s17_s13  ;;  %s28_s15 = int_to_ptr.vmem [resolvable:$true] %s27_s15 }
   0x4   :  { %s169_s18 = scalar_lea.hbm %s308_s0, 32 }
   0x5   :  { %p170_p0 = scmp.ne.s32.totalorder %s308_s0, %s169_s18  ;;  %p173_p1 = scmp.lt.u32.totalorder %s169_s18, %s308_s0 }
   0x7   :  { %p175_p2 = pnand %p173_p1, %p170_p0 }
   0x9   :  { %178 = shalt.err (!%p175_p2)
}
   0xa   :  { %s179_s23 = scalar_lea.vmem %s18_s13, 32  ;;  %p184_p4 = scmp.lt.s32.totalorder %s18_s13, %s18_s13 }
   0xb   :  { %p180_p3 = scmp.ne.s32.totalorder %s18_s13, %s179_s23  ;;  %p185_p5 = scmp.lt.s32.totalorder %s179_s23, %s179_s23 }
   0xd   :  { %p186_p6 = por %p185_p5, %p184_p4 }
   0xf   :  { %p187_p7 = pnand %p186_p6, %p180_p3 }
  0x11   :  { %190 = shalt.err (!%p187_p7)
}
  0x12   :  { %20 = dma.hbm_to_vmem [thread:$0]  %s308_s0, 32, %s18_s13, [#allocation4]  }
  0x13   :  { %s191_s28 = scalar_lea.hbm %s309_s1, 128 }
  0x14   :  { %p192_p8 = scmp.ne.s32.totalorder %s309_s1, %s191_s28  ;;  %p195_p9 = scmp.lt.u32.totalorder %s191_s28, %s309_s1 }
  0x16   :  { %p197_p10 = pnand %p195_p9, %p192_p8 }
  0x18   :  { %200 = shalt.err (!%p197_p10)
}
  0x19   :  { %s201_s6 = scalar_lea.vmem %s28_s15, 128  ;;  %p206_p12 = scmp.lt.s32.totalorder %s28_s15, %s28_s15 }
  0x1a   :  { %p202_p11 = scmp.ne.s32.totalorder %s28_s15, %s201_s6  ;;  %p207_p13 = scmp.lt.s32.totalorder %s201_s6, %s201_s6 }
  0x1c   :  { %p208_p0 = por %p207_p13, %p206_p12 }
  0x1e   :  { %p209_p1 = pnand %p208_p0, %p202_p11 }
  0x20   :  { %212 = shalt.err (!%p209_p1)
}
  0x21   :  { %30 = dma.hbm_to_vmem [thread:$0]  %s309_s1, 128, %s28_s15, [#allocation7]  }
  0x22   :  { %235 = dma.done.wait [#allocation4], 32  }
  0x23   :  { %236 = vsyncadd [#allocation4], 4294967264 }
  0x24   :  { %237 = dma.done.wait [#allocation7], 128  }
  0x25   :  { %238 = vsyncadd [#allocation7], 4294967168  ;;  %vm43_vm0 = vcmask 779264   ;;  %v243_v0 = vmov 0.0   ;;  %vm244_vm1 = vmmov 0   ;;  %vm48_vm2 = vcmask 64512  }
  0x26   :  { %44 = vst.msk [vmem:[#allocation2] sm:$0x3] %vm43_vm0, %v243_v0  ;;  %159 = vmatprep.subr.mxu0 %v243_v0  ;;  %161 = vmatprep.mubr.msk.f32.mxu0 %vm244_vm1, %v243_v0  ;;  %v47_v1 = vld [vmem:[#allocation6] sm:$0xff]  ;;  %v46_v2 = vld [vmem:[#allocation3] sm:$0x3]  ;;  %s245_s9 = smov [#allocation8]  }
  0x27   :  { %160 = vmatpush3.msra.mxu0 %v47_v1  ;;  %v156_v7 = vld [vmem:[%s310_s2] ss:$0 sm:$0xff]  ;;  %s145_s10 = sshll.u32 %s245_s9, 4  ;;  %s146_s10 = int_to_ptr.vmem [resolvable:$true] %s145_s10 }
  0x28   :  { %162 = vmatmul.mubr.msk.f32.vlgmr.msra.gmra.mrb[0].mxu0 %vm48_vm2, %v46_v2  ;;  %s213_s11 = scalar_lea.vmem %s146_s10, 32  ;;  %p218_p3 = scmp.lt.s32.totalorder %s146_s10, %s146_s10 }
  0x29   :  { %p214_p2 = scmp.ne.s32.totalorder %s146_s10, %s213_s11  ;;  %p219_p4 = scmp.lt.s32.totalorder %s213_s11, %s213_s11 }
  0x2b   :  { %p220_p5 = por %p219_p4, %p218_p3 }
  0x2d   :  { %v45_v3 = vld [vmem:[#allocation2] sm:$0x3]  ;;  %p221_p6 = pnand %p220_p5, %p214_p2 }
  0xfb   :  { %v118_v4 = vpop.f32.mrb[0].mxu0 }
  0xfc   :  { %v122_v5 = vadd.f32 %v118_v4, %v45_v3  ;;  %v163_v6 = vpop.f32.mrb[1].mxu0 }
  0xfe   :  { %124 = vst.msk [vmem:[#allocation2] sm:$0x3] %vm43_vm0, %v122_v5 }
 0x105   :  { %v128_v8 = vld [vmem:[#allocation2] sm:$0x3] }
 0x106   :  { %v136_v9 = vadd.f32 %v156_v7, %v128_v8 }
 0x108   :  { %v137_v10 = vmax.f32 %v136_v9, 0.0 }
 0x10a   :  { %138 = vst.msk [vmem:[#allocation8] sm:$0x3] %vm43_vm0, %v137_v10 }
 0x10b   :  { %224 = shalt.err (!%p221_p6)
}
 0x10c   :  { %s225_s14 = scalar_lea.hbm %s311_s3, 32 }
 0x10d   :  { %p226_p7 = scmp.ne.s32.totalorder %s311_s3, %s225_s14  ;;  %p229_p8 = scmp.lt.u32.totalorder %s225_s14, %s311_s3 }
 0x10f   :  { %p231_p9 = pnand %p229_p8, %p226_p7 }
 0x111   :  { %234 = shalt.err (!%p231_p9)
}
 0x112   :  { %148 = dma.vmem_to_hbm [thread:$0]  %s146_s10, 32, %s311_s3, [#allocation5]  }
 0x113   :  { %239 = dma.done.wait [#allocation5], 32  }
 0x114   :  { %240 = vsyncadd [#allocation5], 4294967264 }
 0x115   :  { %152 = vsyncpa [#allocation4], 1 }
 0x116   :  { %153 = vsyncpa [#allocation7], 1 }
 0x117   :  { %154 = vsyncpa [#allocation5], 1 }

</bundles_post_ra>
